<compile_context>
chip_gen: v5e
topology: v5e:2x2
jax: 0.10.0
libtpu: 0.0.40
codegen_flags: <defaults>
</compile_context>

<pallas_src>
import jax
import jax.numpy as jnp
from jax.experimental import pallas as pl
from jax.experimental.pallas import tpu as pltpu


def _make_branchy_kernel(weights, n_true, tile_rows, needs_mask):
    """Builds a kernel closed over static exit weights / batch size / tiling."""
    weights = tuple(float(w) for w in weights)
    num_exits = len(weights)

    def kernel(*refs):
        tgt_ref = refs[0]                       # (TN, 1) int32
        exit_refs = refs[1:1 + num_exits]       # each (TN, C) native dtype
        out_ref = refs[1 + num_exits]           # (1, 128) f32 partial-sum block

        i = pl.program_id(0)
        tgt = tgt_ref[...]                      # (TN, 1)
        tn = tgt.shape[0]

        acc = jnp.zeros((tn, 1), jnp.float32)
        for w, ref in zip(weights, exit_refs):
            logits = ref[...].astype(jnp.float32)            # cast after DMA
            c = logits.shape[-1]
            m = jnp.max(logits, axis=-1, keepdims=True)
            shifted = logits - m                              # reused below
            sumexp = jnp.sum(jnp.exp(shifted), axis=-1, keepdims=True)
            onehot = jax.lax.broadcasted_iota(jnp.int32, (tn, c), 1) == tgt
            picked = jnp.sum(jnp.where(onehot, shifted, 0.0),
                             axis=-1, keepdims=True)
            acc = acc + w * (jnp.log(sumexp) - picked)        # weighted per-row CE

        if needs_mask:                                        # partial last tile
            row_ids = i * tile_rows + jax.lax.broadcasted_iota(
                jnp.int32, (tn, 1), 0)
            acc = jnp.where(row_ids < n_true, acc, 0.0)

        partial = jnp.sum(acc)                                # this tile's sum
        lane = jax.lax.broadcasted_iota(jnp.int32, (1, 128), 1)
        out_ref[...] = jnp.where(lane == 0, partial, 0.0)     # lane-dense store

    return kernel


def weighted_branchy_net_loss(pred, target, weights, *, tile_rows=None,
                              block_budget_bytes=8 * 1024 * 1024):
    """pred: list of (N, C) logits (or a single (N, C) array); target: (N,) int."""
    if isinstance(pred, (list, tuple)):
        preds = list(pred)
        if len(weights) < len(preds):
            raise ValueError(
                f"WeightedBranchyNetLoss needs >= {len(preds)} weights, "
                f"got {len(weights)}")
        use_weights = [float(w) for w in list(weights)[:len(preds)]]
    else:
        preds = [pred]
        use_weights = [1.0]        # single-tensor path: plain cross entropy

    n, c = preds[0].shape
    num_exits = len(preds)

    if tile_rows is None:
        # All exits' tiles are live per step, each double-buffered.
        bytes_per_row = sum(p.dtype.itemsize * c for p in preds)
        tr = max(8, block_budget_bytes // max(1, 2 * bytes_per_row))
        tr = min(tr, pl.cdiv(n, 8) * 8)
        tile_rows = max(8, (tr // 8) * 8)
        if n % 8 == 0:
            # Prefer a tile that divides N exactly (avoids any padding copy).
            t = min(tile_rows, n)
            while n % t != 0:
                t -= 8
            tile_rows = t
    tile_rows = int(tile_rows)

    n_pad = pl.cdiv(n, tile_rows) * tile_rows
    num_tiles = n_pad // tile_rows
    needs_mask = n_pad != n

    tgt = target.astype(jnp.int32).reshape(n, 1)
    if needs_mask:
        # Fallback only when no multiple-of-8 tile divides N.
        tgt = jnp.pad(tgt, ((0, n_pad - n), (0, 0)))
        preds = [jnp.pad(p, ((0, n_pad - n), (0, 0))) for p in preds]

    kernel = _make_branchy_kernel(use_weights, n, tile_rows, needs_mask)

    in_specs = [pl.BlockSpec((tile_rows, 1), lambda i: (i, 0))]      # targets
    in_specs += [pl.BlockSpec((tile_rows, c), lambda i: (i, 0))       # each exit
                 for _ in range(num_exits)]

    out = pl.pallas_call(
        kernel,
        out_shape=jax.ShapeDtypeStruct((1, num_tiles * 128), jnp.float32),
        grid_spec=pltpu.PrefetchScalarGridSpec(
            num_scalar_prefetch=0,
            grid=(num_tiles,),
            in_specs=in_specs,
            out_specs=pl.BlockSpec((1, 128), lambda i: (0, i)),
        ),
        compiler_params=pltpu.CompilerParams(
            dimension_semantics=("parallel",),   # independent per-tile partials
        ),
    )(tgt, *preds)

    # Tiny final reduction outside the kernel: sum of per-tile partials / N.
    return jnp.sum(out) / jnp.float32(n)


if __name__ == "__main__":
    key = jax.random.PRNGKey(0)
    N, C, E = 8, 16, 3
    weights = [1.0, 0.5, 0.25]

    keys = jax.random.split(key, E + 2)
    preds = [jax.random.normal(keys[i], (N, C), dtype=jnp.float32) for i in range(E)]
    target = jax.random.randint(keys[E], (N,), 0, C, dtype=jnp.int32)

    def ce_ref(p, t):
        logp = jax.nn.log_softmax(p.astype(jnp.float32), axis=-1)
        return -jnp.mean(jnp.take_along_axis(logp, t[:, None], axis=-1))

    # 1) Multi-exit (list) path, f32 logits.
    loss = jax.block_until_ready(weighted_branchy_net_loss(preds, target, weights))
    ref = sum(wt * ce_ref(p, target) for p, wt in zip(preds, weights))
    assert jnp.allclose(loss, ref, atol=1e-5, rtol=1e-5), (loss, ref)

    # 2) Single-tensor path (unweighted CE).
    single = jax.block_until_ready(weighted_branchy_net_loss(preds[0], target, weights))
    assert jnp.allclose(single, ce_ref(preds[0], target), atol=1e-5, rtol=1e-5)

    # 3) Native-dtype (bf16) logits DMA'd without host upcast.
    preds_bf16 = [p.astype(jnp.bfloat16) for p in preds]
    loss_bf16 = jax.block_until_ready(
        weighted_branchy_net_loss(preds_bf16, target, weights))
    ref_bf16 = sum(wt * ce_ref(p, target) for p, wt in zip(preds_bf16, weights))
    assert jnp.allclose(loss_bf16, ref_bf16, atol=1e-4, rtol=1e-4), (loss_bf16, ref_bf16)

    # 4) Batch not divisible by the tile (exercises the masked partial tile).
    N2 = 20
    k2 = jax.random.split(keys[E + 1], E + 1)
    preds2 = [jax.random.normal(k2[i], (N2, C), dtype=jnp.float32) for i in range(E)]
    target2 = jax.random.randint(k2[E], (N2,), 0, C, dtype=jnp.int32)
    loss2 = jax.block_until_ready(
        weighted_branchy_net_loss(preds2, target2, weights, tile_rows=8))
    ref2 = sum(wt * ce_ref(p, target2) for p, wt in zip(preds2, weights))
    assert jnp.allclose(loss2, ref2, atol=1e-5, rtol=1e-5), (loss2, ref2)

    print("KERNEL_OK")
</pallas_src>

<mosaic_0001>
module attributes {stable_mosaic.version = 11 : i64} {
  func.func @kernel(%arg0: i32, %arg1: memref<8x1xi32, #tpu.memory_space<vmem>>, %arg2: memref<8x16xf32, #tpu.memory_space<vmem>>, %arg3: memref<8x16xf32, #tpu.memory_space<vmem>>, %arg4: memref<8x16xf32, #tpu.memory_space<vmem>>, %arg5: memref<1x128xf32, #tpu.memory_space<vmem>>) attributes {dimension_semantics = [#tpu.dimension_semantics<parallel>], iteration_bounds = array<i64: 1>, scalar_prefetch = 0 : i64, scratch_operands = 0 : i64, tpu.core_type = #tpu.core_type<tc>, window_params = [{transform_indices = @transform_0, window_bounds = array<i64: 8, 1>}, {transform_indices = @transform_1, window_bounds = array<i64: 8, 16>}, {transform_indices = @transform_2, window_bounds = array<i64: 8, 16>}, {transform_indices = @transform_3, window_bounds = array<i64: 8, 16>}, {transform_indices = @transform_4, window_bounds = array<i64: 1, 128>}]} {
    %c0 = arith.constant 0 : index
    %c0_0 = arith.constant 0 : index
    %0 = vector.load %arg1[%c0, %c0_0] : memref<8x1xi32, #tpu.memory_space<vmem>>, vector<8x1xi32>
    %cst = arith.constant 0.000000e+00 : f32
    %1 = vector.broadcast %cst : f32 to vector<8x1xf32>
    %c0_1 = arith.constant 0 : index
    %c0_2 = arith.constant 0 : index
    %2 = vector.load %arg2[%c0_1, %c0_2] : memref<8x16xf32, #tpu.memory_space<vmem>>, vector<8x16xf32>
    %cst_3 = arith.constant dense<0xFF800000> : vector<8xf32>
    %3 = vector.multi_reduction <maximumf>, %2, %cst_3 [1] : vector<8x16xf32> to vector<8xf32>
    %4 = vector.shape_cast %3 : vector<8xf32> to vector<8x1xf32>
    %5 = vector.broadcast %4 : vector<8x1xf32> to vector<8x16xf32>
    %6 = arith.subf %2, %5 : vector<8x16xf32>
    %7 = math.exp %6 : vector<8x16xf32>
    %cst_4 = arith.constant dense<0.000000e+00> : vector<8xf32>
    %8 = vector.multi_reduction <add>, %7, %cst_4 [1] : vector<8x16xf32> to vector<8xf32>
    %9 = vector.shape_cast %8 : vector<8xf32> to vector<8x1xf32>
    %10 = tpu.iota {dimensions = array<i32: 1>} : vector<8x16xi32>
    %11 = vector.broadcast %0 : vector<8x1xi32> to vector<8x16xi32>
    %12 = arith.cmpi eq, %10, %11 : vector<8x16xi32>
    %cst_5 = arith.constant 0.000000e+00 : f32
    %13 = vector.broadcast %cst_5 : f32 to vector<8x16xf32>
    %14 = arith.select %12, %6, %13 : vector<8x16xi1>, vector<8x16xf32>
    %cst_6 = arith.constant dense<0.000000e+00> : vector<8xf32>
    %15 = vector.multi_reduction <add>, %14, %cst_6 [1] : vector<8x16xf32> to vector<8xf32>
    %16 = vector.shape_cast %15 : vector<8xf32> to vector<8x1xf32>
    %17 = math.log %9 : vector<8x1xf32>
    %18 = arith.subf %17, %16 : vector<8x1xf32>
    %cst_7 = arith.constant 1.000000e+00 : f32
    %19 = vector.broadcast %cst_7 : f32 to vector<8x1xf32>
    %20 = arith.mulf %19, %18 : vector<8x1xf32>
    %21 = arith.addf %1, %20 : vector<8x1xf32>
    %c0_8 = arith.constant 0 : index
    %c0_9 = arith.constant 0 : index
    %22 = vector.load %arg3[%c0_8, %c0_9] : memref<8x16xf32, #tpu.memory_space<vmem>>, vector<8x16xf32>
    %cst_10 = arith.constant dense<0xFF800000> : vector<8xf32>
    %23 = vector.multi_reduction <maximumf>, %22, %cst_10 [1] : vector<8x16xf32> to vector<8xf32>
    %24 = vector.shape_cast %23 : vector<8xf32> to vector<8x1xf32>
    %25 = vector.broadcast %24 : vector<8x1xf32> to vector<8x16xf32>
    %26 = arith.subf %22, %25 : vector<8x16xf32>
    %27 = math.exp %26 : vector<8x16xf32>
    %cst_11 = arith.constant dense<0.000000e+00> : vector<8xf32>
    %28 = vector.multi_reduction <add>, %27, %cst_11 [1] : vector<8x16xf32> to vector<8xf32>
    %29 = vector.shape_cast %28 : vector<8xf32> to vector<8x1xf32>
    %30 = tpu.iota {dimensions = array<i32: 1>} : vector<8x16xi32>
    %31 = vector.broadcast %0 : vector<8x1xi32> to vector<8x16xi32>
    %32 = arith.cmpi eq, %30, %31 : vector<8x16xi32>
    %cst_12 = arith.constant 0.000000e+00 : f32
    %33 = vector.broadcast %cst_12 : f32 to vector<8x16xf32>
    %34 = arith.select %32, %26, %33 : vector<8x16xi1>, vector<8x16xf32>
    %cst_13 = arith.constant dense<0.000000e+00> : vector<8xf32>
    %35 = vector.multi_reduction <add>, %34, %cst_13 [1] : vector<8x16xf32> to vector<8xf32>
    %36 = vector.shape_cast %35 : vector<8xf32> to vector<8x1xf32>
    %37 = math.log %29 : vector<8x1xf32>
    %38 = arith.subf %37, %36 : vector<8x1xf32>
    %cst_14 = arith.constant 5.000000e-01 : f32
    %39 = vector.broadcast %cst_14 : f32 to vector<8x1xf32>
    %40 = arith.mulf %39, %38 : vector<8x1xf32>
    %41 = arith.addf %21, %40 : vector<8x1xf32>
    %c0_15 = arith.constant 0 : index
    %c0_16 = arith.constant 0 : index
    %42 = vector.load %arg4[%c0_15, %c0_16] : memref<8x16xf32, #tpu.memory_space<vmem>>, vector<8x16xf32>
    %cst_17 = arith.constant dense<0xFF800000> : vector<8xf32>
    %43 = vector.multi_reduction <maximumf>, %42, %cst_17 [1] : vector<8x16xf32> to vector<8xf32>
    %44 = vector.shape_cast %43 : vector<8xf32> to vector<8x1xf32>
    %45 = vector.broadcast %44 : vector<8x1xf32> to vector<8x16xf32>
    %46 = arith.subf %42, %45 : vector<8x16xf32>
    %47 = math.exp %46 : vector<8x16xf32>
    %cst_18 = arith.constant dense<0.000000e+00> : vector<8xf32>
    %48 = vector.multi_reduction <add>, %47, %cst_18 [1] : vector<8x16xf32> to vector<8xf32>
    %49 = vector.shape_cast %48 : vector<8xf32> to vector<8x1xf32>
    %50 = tpu.iota {dimensions = array<i32: 1>} : vector<8x16xi32>
    %51 = vector.broadcast %0 : vector<8x1xi32> to vector<8x16xi32>
    %52 = arith.cmpi eq, %50, %51 : vector<8x16xi32>
    %cst_19 = arith.constant 0.000000e+00 : f32
    %53 = vector.broadcast %cst_19 : f32 to vector<8x16xf32>
    %54 = arith.select %52, %46, %53 : vector<8x16xi1>, vector<8x16xf32>
    %cst_20 = arith.constant dense<0.000000e+00> : vector<8xf32>
    %55 = vector.multi_reduction <add>, %54, %cst_20 [1] : vector<8x16xf32> to vector<8xf32>
    %56 = vector.shape_cast %55 : vector<8xf32> to vector<8x1xf32>
    %57 = math.log %49 : vector<8x1xf32>
    %58 = arith.subf %57, %56 : vector<8x1xf32>
    %cst_21 = arith.constant 2.500000e-01 : f32
    %59 = vector.broadcast %cst_21 : f32 to vector<8x1xf32>
    %60 = arith.mulf %59, %58 : vector<8x1xf32>
    %61 = arith.addf %41, %60 : vector<8x1xf32>
    %62 = vector.shape_cast %61 : vector<8x1xf32> to vector<1x8x1xf32>
    %cst_22 = arith.constant dense<0.000000e+00> : vector<1xf32>
    %63 = vector.multi_reduction <add>, %62, %cst_22 [1, 2] : vector<1x8x1xf32> to vector<1xf32>
    %64 = vector.shape_cast %63 : vector<1xf32> to vector<1x1x1xf32>
    %65 = vector.extract %64[0, 0, 0] : f32 from vector<1x1x1xf32>
    %66 = tpu.iota {dimensions = array<i32: 1>} : vector<1x128xi32>
    %c0_i32 = arith.constant 0 : i32
    %67 = vector.broadcast %c0_i32 : i32 to vector<1x128xi32>
    %68 = arith.cmpi eq, %66, %67 : vector<1x128xi32>
    %cst_23 = arith.constant 0.000000e+00 : f32
    %69 = vector.broadcast %65 : f32 to vector<1x128xf32>
    %70 = vector.broadcast %cst_23 : f32 to vector<1x128xf32>
    %71 = arith.select %68, %69, %70 : vector<1x128xi1>, vector<1x128xf32>
    %c0_24 = arith.constant 0 : index
    %c0_25 = arith.constant 0 : index
    %72 = vector.load %arg5[%c0_24, %c0_25] : memref<1x128xf32, #tpu.memory_space<vmem>>, vector<1x128xf32>
    tpu.vector_store %arg5[%c0_24, %c0_25], %71 {strides = array<i32>} : memref<1x128xf32, #tpu.memory_space<vmem>>, vector<1x128xf32>,
    return
  }
  func.func @transform_0(%arg0: i32) -> (i32, i32) {
    %c0_i32 = arith.constant 0 : i32
    %c0_i32_0 = arith.constant 0 : i32
    return %arg0, %c0_i32 : i32, i32
  }
  func.func @transform_1(%arg0: i32) -> (i32, i32) {
    %c0_i32 = arith.constant 0 : i32
    %c0_i32_0 = arith.constant 0 : i32
    return %arg0, %c0_i32 : i32, i32
  }
  func.func @transform_2(%arg0: i32) -> (i32, i32) {
    %c0_i32 = arith.constant 0 : i32
    %c0_i32_0 = arith.constant 0 : i32
    return %arg0, %c0_i32 : i32, i32
  }
  func.func @transform_3(%arg0: i32) -> (i32, i32) {
    %c0_i32 = arith.constant 0 : i32
    %c0_i32_0 = arith.constant 0 : i32
    return %arg0, %c0_i32 : i32, i32
  }
  func.func @transform_4(%arg0: i32) -> (i32, i32) {
    %c0_i32 = arith.constant 0 : i32
    %c0_i32_0 = arith.constant 0 : i32
    return %c0_i32, %arg0 : i32, i32
  }
}

</mosaic_0001>

<bundles_post_ra>
// kernel: tpu_custom_call.1
= control target key start
LH: loop header
LB: loop body
LE: loop exit
PB: predicated region body
PF: predicated region fallthrough
CT: control target
= control target key end

     0   :  { %9 = vsyncpa [#allocation3], 0  ;;  %s294_s0 = inlined_call_operand.vmem [shape: s32[8,1], index: 0, kind: input, shape index: {}]   ;;  %s295_s1 = inlined_call_operand.vmem [shape: f32[8,16], index: 1, kind: input, shape index: {}]   ;;  %s296_s2 = inlined_call_operand.hbm [shape: f32[8,16], index: 2, kind: input, shape index: {}]   ;;  %s297_s3 = inlined_call_operand.hbm [shape: f32[8,16], index: 3, kind: input, shape index: {}]   ;;  %s298_s4 = inlined_call_operand.hbm [shape: f32[1,128], index: 4, kind: output, shape index: {}]  }
   0x1   :  { %10 = vsyncpa [#allocation6], 0 }
   0x2   :  { %11 = vsyncpa [#allocation4], 0  ;;  %s21_s17 = sshll.u32 %s296_s2, 4  ;;  %s241_s18 = smov [#allocation2]   ;;  %s22_s17 = int_to_ptr.hbm [resolvable:$true] %s21_s17 }
   0x3   :  { %s23_s19 = sshll.u32 %s241_s18, 4  ;;  %s32_s22 = sshll.u32 %s297_s3, 4  ;;  %s24_s19 = int_to_ptr.vmem [resolvable:$true] %s23_s19  ;;  %s33_s22 = int_to_ptr.hbm [resolvable:$true] %s32_s22 }
   0x4   :  { %26 = dma.hbm_to_vmem [thread:$0]  %s22_s17, 128, %s24_s19, [#allocation3]  }
   0x5   :  { %s242_s23 = smov [#allocation5]  }
   0x6   :  { %s34_s24 = sshll.u32 %s242_s23, 4  ;;  %s35_s24 = int_to_ptr.vmem [resolvable:$true] %s34_s24 }
   0x7   :  { %37 = dma.hbm_to_vmem [thread:$0]  %s33_s22, 128, %s35_s24, [#allocation6]  }
   0x8   :  { %235 = dma.done.wait [#allocation3], 128  }
   0x9   :  { %236 = vsyncadd [#allocation3], 4294967168 }
   0xa   :  { %237 = dma.done.wait [#allocation6], 128  }
   0xb   :  { %238 = vsyncadd [#allocation6], 4294967168  ;;  %v243_v0 = vmov 0   ;;  %vm48_vm0 = vcmask 130048   ;;  %v91_v1 = vld [vmem:[#allocation5] sm:$0xff]  ;;  %v72_v2 = vld [vmem:[#allocation2] sm:$0xff]  ;;  %v58_v21 = vlaneseq }
   0xc   :  { %149 = vset.pattern.permute.xlu1 %v243_v0  ;;  %150 = vset.pattern.permute.xlu0 %v243_v0  ;;  %v92_v3 = vsel %vm48_vm0, %v91_v1, -inf  ;;  %v73_v4 = vsel %vm48_vm0, %v72_v2, -inf  ;;  %v47_v5 = vld [vmem:[%s295_s1] sm:$0xff]  ;;  %vm110_vm2 = vcmask 7168   ;;  %s132_s29 = sshll.u32 %s298_s4, 4  ;;  %s133_s29 = int_to_ptr.hbm [resolvable:$true] %s132_s29 }
   0xd   :  { %93 = vmax.xlane.f32.xlu1 %v92_v3  ;;  %74 = vmax.xlane.f32.xlu0 %v73_v4  ;;  %v49_v6 = vsel %vm48_vm0, %v47_v5, -inf  ;;  %v46_v7 = vld [vmem:[%s294_s0] sm:$0xff]  ;;  %v59_v24 = vand.u32 127, %v58_v21  ;;  %s244_s0 = smov [#allocation7]  }
   0xe   :  { %s130_s1 = sshll.u32 %s244_s0, 4  ;;  %s131_s1 = int_to_ptr.vmem [resolvable:$true] %s130_s1 }
   0xf   :  { %vm121_vm3 = vcmp.eq.s32.totalorder %v59_v24, 0 }
  0x15   :  { %50 = vmax.xlane.f32.xlu0 %v49_v6 }
  0x26   :  { %61 = vperm.xlu1 %149, %v46_v7  }
  0x80   :  { %v75_v8 = vpop.xlane.xlu0 %74  ;;  %v94_v9 = vpop.xlane.xlu1 %93 }
  0x81   :  { %v76_v10 = vsub.f32 %v72_v2, %v75_v8  ;;  %v95_v11 = vsub.f32 %v91_v1, %v94_v9 }
  0x83   :  { %v77_v12 = vmul.f32 1.442695, %v76_v10  ;;  %v96_v13 = vmul.f32 1.442695, %v95_v11 }
  0x85   :  { %151 = vpow2.f32 %v77_v12 }
  0x86   :  { %153 = vpow2.f32 %v96_v13 }
  0x88   :  { %v51_v14 = vpop.xlane.xlu0 %50 }
  0x89   :  { %v52_v15 = vsub.f32 %v47_v5, %v51_v14 }
  0x8b   :  { %v152_v16 = vpop.eup %151  ;;  %v53_v17 = vmul.f32 1.442695, %v52_v15 }
  0x8c   :  { %v154_v18 = vpop.eup %153  ;;  %v79_v19 = vsel %vm48_vm0, %v152_v16, 0.0 }
  0x8d   :  { %155 = vpow2.f32 %v53_v17  ;;  %80 = vadd.xlane.f32.xlu2 %v79_v19  ;;  %v98_v20 = vsel %vm48_vm0, %v154_v18, 0.0 }
  0x8e   :  { %99 = vadd.xlane.f32.xlu0 %v98_v20 }
  0x93   :  { %v156_v22 = vpop.eup %155 }
  0x94   :  { %v55_v23 = vsel %vm48_vm0, %v156_v22, 0.0 }
  0x95   :  { %56 = vadd.xlane.f32.xlu2 %v55_v23 }
  0x98   :  { %v62_v25 = vpop.permute.xlu1 %61 }
  0x99   :  { %vm63_vm1 = vcmp.eq.s32.totalorder %v59_v24, %v62_v25 }
  0x9a   :  { %v64_v26 = vsel %vm63_vm1, %v52_v15, 0.0  ;;  %v82_v27 = vsel %vm63_vm1, %v76_v10, 0.0  ;;  %v101_v30 = vsel %vm63_vm1, %v95_v11, 0.0 }
  0x9b   :  { %v65_v28 = vsel %vm48_vm0, %v64_v26, 0.0  ;;  %v83_v29 = vsel %vm48_vm0, %v82_v27, 0.0  ;;  %v102_v31 = vsel %vm48_vm0, %v101_v30, 0.0 }
  0x9c   :  { %66 = vadd.xlane.f32.xlu0 %v65_v28 }
  0x9d   :  { %84 = vadd.xlane.f32.xlu2 %v83_v29 }
  0xa5   :  { %103 = vadd.xlane.f32.xlu2 %v102_v31 }
 0x100   :  { %v81_v32 = vpop.xlane.xlu2 %80 }
 0x101   :  { %157 = vlog2.f32 %v81_v32  ;;  %v100_v34 = vpop.xlane.xlu0 %99 }
 0x107   :  { %v158_v35 = vpop.eup %157 }
 0x108   :  { %v57_v33 = vpop.xlane.xlu2 %56  ;;  %v87_v38 = vmul.f32 0.6931472, %v158_v35 }
 0x109   :  { %159 = vlog2.f32 %v57_v33 }
 0x10a   :  { %161 = vlog2.f32 %v100_v34 }
 0x10f   :  { %v160_v36 = vpop.eup %159  ;;  %v67_v42 = vpop.xlane.xlu0 %66 }
 0x110   :  { %v85_v37 = vpop.xlane.xlu2 %84  ;;  %v69_v39 = vmul.f32 0.6931472, %v160_v36  ;;  %v162_v41 = vpop.eup %161 }
 0x111   :  { %v88_v40 = vsub.f32 %v87_v38, %v85_v37  ;;  %v106_v43 = vmul.f32 0.6931472, %v162_v41 }
 0x112   :  { %v70_v44 = vsub.f32 %v69_v39, %v67_v42 }
 0x113   :  { %v89_v45 = vmul.f32 0.5, %v88_v40 }
 0x115   :  { %v90_v48 = vadd.f32 %v89_v45, %v70_v44 }
 0x118   :  { %v104_v46 = vpop.xlane.xlu2 %103 }
 0x119   :  { %v107_v47 = vsub.f32 %v106_v43, %v104_v46 }
 0x11b   :  { %v108_v49 = vmul.f32 0.25, %v107_v47 }
 0x11d   :  { %v109_v50 = vadd.f32 %v108_v49, %v90_v48 }
 0x11f   :  { %v111_v51 = vsel %vm110_vm2, %v109_v50, 0.0 }
 0x120   :  { %112 = vadd.xlane.f32.xlu0 %v111_v51 }
 0x193   :  { %v113_v52 = vpop.xlane.xlu0 %112 }
 0x194   :  { %v114_v53 = vrot.slane %v113_v52, 4 }
 0x196   :  { %v115_v54 = vadd.f32 %v114_v53, %v113_v52 }
 0x198   :  { %v116_v55 = vrot.slane %v115_v54, 2 }
 0x19a   :  { %v117_v56 = vadd.f32 %v116_v55, %v115_v54 }
 0x19c   :  { %v118_v57 = vrot.slane %v117_v56, 1 }
 0x19e   :  { %v119_v58 = vadd.f32 %v118_v57, %v117_v56 }
 0x1a0   :  { %143 = vpush %v119_v58 }
 0x1d1   :  { %s144_s30 = spop %143 }
 0x1d2   :  { %v122_v59 = vstv %s144_s30 }
 0x1d3   :  { %v123_v60 = vsel %vm121_vm3, %v122_v59, 0.0 }
 0x1d4   :  { %124 = vst [vmem:[#allocation7] sm:$0x1] %v123_v60 }
 0x1d5   :  { %135 = dma.vmem_to_hbm [thread:$0]  %s131_s1, 16, %s133_s29, [#allocation4]  }
 0x1d6   :  { %239 = dma.done.wait [#allocation4], 16  }
 0x1d7   :  { %240 = vsyncadd [#allocation4], 4294967280 }
 0x1d8   :  { %140 = vsyncpa [#allocation3], 1 }
 0x1d9   :  { %141 = vsyncpa [#allocation6], 1 }
 0x1da   :  { %142 = vsyncpa [#allocation4], 1 }

</bundles_post_ra>
